<compile_context>
chip_gen: v5e
topology: v5e:2x2
jax: 0.10.0
libtpu: 0.0.40
codegen_flags: <defaults>
</compile_context>

<pallas_src>
import math
from functools import partial

import jax
import jax.numpy as jnp
from jax import lax
from jax.experimental import pallas as pl
from jax.experimental.pallas import tpu as pltpu

LANE = 128
SUBLANE = 8
CHUNK = SUBLANE * LANE          # 1024: flat granularity for the pad-free path
BLOCK_ROWS = 4096               # (4096,128) f32 tile = 2 MiB; 2 in x 2 bufs = 8 MiB VMEM
NSPLIT = 2                      # outer 'parallel' axis (both TCs on v7x)


def _bd_kernel(pred_ref, tgt_ref, out_ref, *, rows, block_rows, steps, needs_mask):
    c = pl.program_id(0)   # parallel split
    i = pl.program_id(1)   # sequential reduction axis

    # out_ref is the (8,128) per-split partial-sum accumulator, resident in
    # VMEM across the whole `i` axis (its index map is constant in i).
    @pl.when(i == 0)
    def _():
        out_ref[...] = jnp.zeros_like(out_ref)

    # Cast in-kernel; inputs are DMA'd in their native dtype.
    p = pred_ref[...].astype(jnp.float32)
    t = tgt_ref[...].astype(jnp.float32)

    if needs_mask:
        # Ragged tail: mask rows past the true row count.  Masked elements are
        # forced to (p=1e-6, t=0), which contributes exactly 0 to the sum.
        row0 = (c * steps + i) * block_rows
        rid = row0 + lax.broadcasted_iota(jnp.int32, p.shape, 0)
        valid = rid < rows
        p = jnp.where(valid, p, 1e-6)
        t = jnp.where(valid, t, 0.0)

    # Elementwise BCE term: -(t*log(p+1e-6) + (1-t)*log(1-p+1e-6))
    # (two-log form kept to preserve exact semantics for soft targets)
    term = -(t * jnp.log(p + 1e-6) + (1.0 - t) * jnp.log(1.0 - p + 1e-6))

    # Reduce only across sublane-tile groups (pure VPU adds); the final
    # cross-lane reduction happens once, outside the kernel.
    out_ref[...] += term.reshape(-1, SUBLANE, LANE).sum(axis=0)


def bd_loss(pred, target):
    """Pallas implementation of BD.forward(pred, target)."""
    assert pred.shape == target.shape
    b = pred.shape[0]
    n = math.prod(pred.shape)

    pred_flat = pred.reshape(-1)
    tgt_flat = target.reshape(-1)

    if n % CHUNK != 0:
        # Rare fallback (n not a multiple of 8*128): tiny pad so the flat view
        # forms (rows, 128) with rows % 8 == 0.  Pad values contribute ~0.
        # TODO(synk): avoid this copy with element-level masking on a 1-D view.
        pad = (-n) % CHUNK
        pred_flat = jnp.concatenate(
            [pred_flat, jnp.full((pad,), 1e-6, pred_flat.dtype)])
        tgt_flat = jnp.concatenate(
            [tgt_flat, jnp.zeros((pad,), tgt_flat.dtype)])

    rows = pred_flat.shape[0] // LANE            # multiple of 8
    pred2d = pred_flat.reshape(rows, LANE)
    tgt2d = tgt_flat.reshape(rows, LANE)

    block_rows = min(BLOCK_ROWS, rows)           # multiple of 8
    total_blocks = -(-rows // block_rows)
    steps = -(-total_blocks // NSPLIT)
    needs_mask = (NSPLIT * steps * block_rows != rows)

    def in_map(c, i):
        # Clamp so fully-out-of-range grid steps re-read the last valid block;
        # their contribution is zeroed by the in-kernel mask.
        return (jnp.minimum(c * steps + i, total_blocks - 1), 0)

    kernel = partial(_bd_kernel, rows=rows, block_rows=block_rows,
                     steps=steps, needs_mask=needs_mask)

    partials = pl.pallas_call(
        kernel,
        out_shape=jax.ShapeDtypeStruct((NSPLIT, SUBLANE, LANE), jnp.float32),
        grid_spec=pltpu.PrefetchScalarGridSpec(
            num_scalar_prefetch=0,
            grid=(NSPLIT, steps),
            in_specs=[
                pl.BlockSpec((block_rows, LANE), in_map),
                pl.BlockSpec((block_rows, LANE), in_map),
            ],
            out_specs=pl.BlockSpec((None, SUBLANE, LANE), lambda c, i: (c, 0, 0)),
        ),
        compiler_params=pltpu.CompilerParams(
            dimension_semantics=("parallel", "arbitrary"),
            vmem_limit_bytes=32 << 20,   # raise v5e's 16 MiB default; safe on v7x
        ),
    )(pred2d, tgt2d)

    total = jnp.sum(partials)
    # Match PyTorch: each batch-image sum divided by 512/512, averaged over b.
    return total / 512.0 / 512.0 / b


def bd_loss_ref(pred, target):
    """Pure-JAX reference matching the PyTorch _bd_loss."""
    b = pred.shape[0]
    iou = 0.0
    for i in range(b):
        t = target[i]
        p = pred[i]
        iand1 = -jnp.sum(t * jnp.log(p + 1e-6) + (1 - t) * jnp.log(1 - p + 1e-6))
        iou = iou + iand1 / 512 / 512
    return iou / b


if __name__ == "__main__":
    key = jax.random.PRNGKey(0)
    k1, k2 = jax.random.split(key)
    # Small NCHW segmentation-style inputs: pred in (0,1), target binary.
    pred = jax.nn.sigmoid(jax.random.normal(k1, (2, 4, 16, 16), jnp.float32))
    target = (jax.random.uniform(k2, (2, 4, 16, 16)) > 0.5).astype(jnp.float32)

    out = bd_loss(pred, target)
    out = jax.block_until_ready(out)

    ref = bd_loss_ref(pred, target)
    assert jnp.allclose(out, ref, rtol=1e-5, atol=1e-6), (out, ref)

    print("KERNEL_OK")
</pallas_src>

<mosaic_0001>
module attributes {stable_mosaic.version = 11 : i64} {
  func.func @_bd_kernel(%arg0: i32, %arg1: i32, %arg2: memref<16x128xf32, #tpu.memory_space<vmem>>, %arg3: memref<16x128xf32, #tpu.memory_space<vmem>>, %arg4: memref<1x8x128xf32, #tpu.memory_space<vmem>>) attributes {dimension_semantics = [#tpu.dimension_semantics<parallel>, #tpu.dimension_semantics<arbitrary>], iteration_bounds = array<i64: 2, 1>, scalar_prefetch = 0 : i64, scratch_operands = 0 : i64, tpu.core_type = #tpu.core_type<tc>, window_params = [{transform_indices = @transform_0, window_bounds = array<i64: 16, 128>}, {transform_indices = @transform_1, window_bounds = array<i64: 16, 128>}, {transform_indices = @transform_2, window_bounds = array<i64: 1, 8, 128>}]} {
    %c0_i32 = arith.constant 0 : i32
    %0 = arith.cmpi eq, %arg1, %c0_i32 : i32
    %1 = arith.extui %0 : i1 to i32
    %c0_i32_0 = arith.constant 0 : i32
    %2 = arith.cmpi ne, %1, %c0_i32_0 : i32
    scf.if %2 {
      %cst_18 = arith.constant 0.000000e+00 : f32
      %40 = vector.broadcast %cst_18 : f32 to vector<8x128xf32>
      %c0_19 = arith.constant 0 : index
      %c0_20 = arith.constant 0 : index
      %c0_21 = arith.constant 0 : index
      %41 = vector.load %arg4[%c0_19, %c0_20, %c0_21] : memref<1x8x128xf32, #tpu.memory_space<vmem>>, vector<1x8x128xf32>
      %42 = vector.shape_cast %41 : vector<1x8x128xf32> to vector<8x128xf32>
      %43 = vector.shape_cast %40 : vector<8x128xf32> to vector<1x8x128xf32>
      tpu.vector_store %arg4[%c0_19, %c0_20, %c0_21], %43 {strides = array<i32>} : memref<1x8x128xf32, #tpu.memory_space<vmem>>, vector<1x8x128xf32>,
    } else {
    }
    %c0 = arith.constant 0 : index
    %c0_1 = arith.constant 0 : index
    %3 = vector.load %arg2[%c0, %c0_1] : memref<16x128xf32, #tpu.memory_space<vmem>>, vector<16x128xf32>
    %c0_2 = arith.constant 0 : index
    %c0_3 = arith.constant 0 : index
    %4 = vector.load %arg3[%c0_2, %c0_3] : memref<16x128xf32, #tpu.memory_space<vmem>>, vector<16x128xf32>
    %c1_i32 = arith.constant 1 : i32
    %5 = arith.muli %arg0, %c1_i32 : i32
    %6 = arith.addi %5, %arg1 : i32
    %c16_i32 = arith.constant 16 : i32
    %7 = arith.muli %6, %c16_i32 : i32
    %8 = tpu.iota {dimensions = array<i32: 0>} : vector<16x128xi32>
    %9 = vector.broadcast %7 : i32 to vector<16x128xi32>
    %10 = arith.addi %9, %8 : vector<16x128xi32>
    %c16_i32_4 = arith.constant 16 : i32
    %11 = vector.broadcast %c16_i32_4 : i32 to vector<16x128xi32>
    %12 = arith.cmpi slt, %10, %11 : vector<16x128xi32>
    %cst = arith.constant 9.99999997E-7 : f32
    %13 = vector.broadcast %cst : f32 to vector<16x128xf32>
    %14 = arith.select %12, %3, %13 : vector<16x128xi1>, vector<16x128xf32>
    %cst_5 = arith.constant 0.000000e+00 : f32
    %15 = vector.broadcast %cst_5 : f32 to vector<16x128xf32>
    %16 = arith.select %12, %4, %15 : vector<16x128xi1>, vector<16x128xf32>
    %cst_6 = arith.constant 9.99999997E-7 : f32
    %17 = vector.broadcast %cst_6 : f32 to vector<16x128xf32>
    %18 = arith.addf %14, %17 : vector<16x128xf32>
    %19 = math.log %18 : vector<16x128xf32>
    %20 = arith.mulf %16, %19 : vector<16x128xf32>
    %cst_7 = arith.constant 1.000000e+00 : f32
    %21 = vector.broadcast %cst_7 : f32 to vector<16x128xf32>
    %22 = arith.subf %21, %16 : vector<16x128xf32>
    %cst_8 = arith.constant 1.000000e+00 : f32
    %23 = vector.broadcast %cst_8 : f32 to vector<16x128xf32>
    %24 = arith.subf %23, %14 : vector<16x128xf32>
    %cst_9 = arith.constant 9.99999997E-7 : f32
    %25 = vector.broadcast %cst_9 : f32 to vector<16x128xf32>
    %26 = arith.addf %24, %25 : vector<16x128xf32>
    %27 = math.log %26 : vector<16x128xf32>
    %28 = arith.mulf %22, %27 : vector<16x128xf32>
    %29 = arith.addf %20, %28 : vector<16x128xf32>
    %cst_10 = arith.constant 0.000000e+00 : f32
    %30 = vector.broadcast %cst_10 : f32 to vector<16x128xf32>
    %31 = arith.subf %30, %29 : vector<16x128xf32>
    %c0_11 = arith.constant 0 : index
    %c0_12 = arith.constant 0 : index
    %c0_13 = arith.constant 0 : index
    %32 = vector.load %arg4[%c0_11, %c0_12, %c0_13] : memref<1x8x128xf32, #tpu.memory_space<vmem>>, vector<1x8x128xf32>
    %33 = vector.shape_cast %32 : vector<1x8x128xf32> to vector<8x128xf32>
    %34 = vector.shape_cast %31 : vector<16x128xf32> to vector<2x8x128xf32>
    %cst_14 = arith.constant dense<0.000000e+00> : vector<8x128xf32>
    %35 = vector.multi_reduction <add>, %34, %cst_14 [0] : vector<2x8x128xf32> to vector<8x128xf32>
    %36 = arith.addf %33, %35 : vector<8x128xf32>
    %c0_15 = arith.constant 0 : index
    %c0_16 = arith.constant 0 : index
    %c0_17 = arith.constant 0 : index
    %37 = vector.load %arg4[%c0_15, %c0_16, %c0_17] : memref<1x8x128xf32, #tpu.memory_space<vmem>>, vector<1x8x128xf32>
    %38 = vector.shape_cast %37 : vector<1x8x128xf32> to vector<8x128xf32>
    %39 = vector.shape_cast %36 : vector<8x128xf32> to vector<1x8x128xf32>
    tpu.vector_store %arg4[%c0_15, %c0_16, %c0_17], %39 {strides = array<i32>} : memref<1x8x128xf32, #tpu.memory_space<vmem>>, vector<1x8x128xf32>,
    return
  }
  func.func @transform_0(%arg0: i32, %arg1: i32) -> (i32, i32) {
    %c1_i32 = arith.constant 1 : i32
    %0 = arith.muli %arg0, %c1_i32 : i32
    %1 = arith.addi %0, %arg1 : i32
    %c0_i32 = arith.constant 0 : i32
    %2 = arith.minsi %1, %c0_i32 : i32
    %c0_i32_0 = arith.constant 0 : i32
    %c0_i32_1 = arith.constant 0 : i32
    return %2, %c0_i32_0 : i32, i32
  }
  func.func @transform_1(%arg0: i32, %arg1: i32) -> (i32, i32) {
    %c1_i32 = arith.constant 1 : i32
    %0 = arith.muli %arg0, %c1_i32 : i32
    %1 = arith.addi %0, %arg1 : i32
    %c0_i32 = arith.constant 0 : i32
    %2 = arith.minsi %1, %c0_i32 : i32
    %c0_i32_0 = arith.constant 0 : i32
    %c0_i32_1 = arith.constant 0 : i32
    return %2, %c0_i32_0 : i32, i32
  }
  func.func @transform_2(%arg0: i32, %arg1: i32) -> (i32, i32, i32) {
    %c0_i32 = arith.constant 0 : i32
    %c0_i32_0 = arith.constant 0 : i32
    %c0_i32_1 = arith.constant 0 : i32
    return %arg0, %c0_i32, %c0_i32_0 : i32, i32, i32
  }
}

</mosaic_0001>

<bundles_post_ra>
// kernel: tpu_custom_call.1
= control target key start
LH: loop header
LB: loop body
LE: loop exit
PB: predicated region body
PF: predicated region fallthrough
CT: control target
= control target key end

     0   :  { %7 = vsyncpa [#allocation3], 0  ;;  %s896_s0 = inlined_call_operand.hbm [shape: f32[16,128], index: 0, kind: input, shape index: {}]   ;;  %s897_s1 = inlined_call_operand.hbm [shape: f32[16,128], index: 1, kind: input, shape index: {}]   ;;  %s898_s2 = inlined_call_operand.hbm [shape: f32[2,8,128], index: 2, kind: output, shape index: {}]  }
   0x1   :  { %9 = vsyncpa [#allocation3 + $0x1], 0 }
   0x2   :  { %10 = vsyncpa [#allocation6], 0 }
   0x3   :  { %12 = vsyncpa [#allocation6 + $0x1], 0 }
   0x4   :  { %13 = vsyncpa [#allocation4], 0 }
   0x5   :  { %15 = vsyncpa [#allocation4 + $0x1], 0  ;;  %s723_s9 = smov 0   ;;  %s725_s10 = smov 0  }
   0x6   :  { %s727_s11 = smov 0   ;;  %s729_s12 = smov 0  }
   0x7   :  { %s731_s13 = smov 0   ;;  %s733_s14 = smov 0  }
   0x8   :  { %s735_s15 = smov 0   ;;  %s737_s16 = smov 0  }
   0x9 LB: > { %s412_s17 = sadd.s32 4294967295, %s702_s16   ;;  %s413_s18 = sadd.s32 4294967294, %s702_s16   ;;  %s702_s16 = sphi %s737_s16, %s21_s16   ;;  %s698_s15 = sphi %s735_s15, %s910_s15   ;;  %s694_s14 = sphi %s733_s14, %s909_s14   ;;  %s690_s13 = sphi %s731_s13, %s886_s13   ;;  %s686_s12 = sphi %s729_s12, %s908_s12   ;;  %s682_s11 = sphi %s727_s11, %s907_s11   ;;  %s678_s10 = sphi %s725_s10, %s906_s10   ;;  %s674_s9 = sphi %s723_s9, %s905_s9  }
   0xa   : > { %s33_s19 = sadd.s32 1, %s698_s15  ;;  %p671_p1 = scmp.ne.s32.totalorder %s690_s13, 0 }
   0xb   : > { %p35_p0 = scmp.ge.s32.totalorder %s33_s19, 2  ;;  %p54_p2 = scmp.eq.s32.totalorder %s702_s16, 0 }
   0xc   : > { %p59_p3 = scmp.ne.s32.totalorder %s690_s13, %s686_s12  ;;  %p60_p5 = scmp.eq.s32.totalorder %s412_s17, 0 }
   0xd   : > { %s912_s19 = smov (%p35_p0, %s33_s19), 0  ;;  %p769_p4 = por %p671_p1, %p54_p2 }
   0xe   : > { %p773_p6 = por %p60_p5, %p59_p3  ;;  %s101_s22 = ssub.s32 %s698_s15, %s912_s19 }
   0xf   : > { %p102_p7 = scmp.eq.s32.totalorder %s101_s22, 0  ;;  %s104_s23 = sadd.s32 1, %s682_s11 }
  0x10   : > { %p114_p8 = scmp.ne.s32.totalorder %s682_s11, %s678_s10  ;;  %p115_p9 = scmp.eq.s32.totalorder %s412_s17, 1 }
  0x11   : > { %s781_s24 = scalar_select %p102_p7, %s682_s11, %s104_s23  }
  0x12   : > { %p120_p10 = scmp.ne.s32.totalorder %s678_s10, %s674_s9  ;;  %p121_p11 = scmp.eq.s32.totalorder %s413_s18, 1 }
  0x13   : > { %p787_p12 = por %p115_p9, %p114_p8  ;;  %p415_p13 = scmp.ge.s32.totalorder %s702_s16, 2 }
  0x14   : > { %p792_p0 = por %p121_p11, %p120_p10  ;;  %p450_p1 = scmp.lt.s32.totalorder %s702_s16, 2 }
  0x15   : > { %s154_s29 = sshll.u32 %s896_s0, 4  ;;  %s704_s30 = smov [#allocation2]   ;;  %s155_s29 = int_to_ptr.hbm [resolvable:$true] %s154_s29 }
  0x16   : > { %s156_s3 = sshll.u32 %s704_s30, 4  ;;  %p802_p2 = pnand %p450_p1, %p769_p4  ;;  %s157_s3 = int_to_ptr.vmem [resolvable:$true] %s156_s3 }
  0x17   : > { %p422_p3 = scmp.ge.s32.totalorder %s702_s16, 1  ;;  %p189_p5 = scmp.lt.s32.totalorder %s702_s16, 3 }
  0x18   : > { %s535_s5 = sshra.s32 %s155_s29, 4  ;;  %p539_p8 = pneg %p802_p2  ;;  %s536_s5 = int_to_ptr.hbm [resolvable:$true] %s535_s5 }
  0x19   : > { %s537_s6 = scalar_lea.hbm %s536_s5, 16  ;;  %s542_s12 = scalar_lea.hbm %s896_s0, 16 }
  0x1a   : > { %p538_p7 = scmp.ne.s32.totalorder %s536_s5, %s537_s6  ;;  %p544_p4 = scmp.lt.s32.totalorder %s542_s12, %s537_s6 }
  0x1c   : > { %p540_p9 = pnand %p539_p8, %p538_p7 }
  0x1e   : > { %p541_p10 = pneg %p540_p9 }
  0x20   : > { %p546_p11 = pnand %p544_p4, %p541_p10 }
  0x22   : > { %549 = shalt.err (!%p546_p11)
}
  0x23   : > { %s705_s17 = smov 128   ;;  %s706_s18 = smov 8  }
  0x24   : > { %442 = dma.hbm_to_vmem [thread:$0]  (!%p802_p2), %s155_s29, 256, %s157_s3, [#allocation3], %s705_s17, %s705_s17, %s706_s18  }
  0x25   : > { %p822_p1 = pnand %p422_p3, %p189_p5  ;;  %s179_s27 = sshll.u32 %s897_s1, 4  ;;  %s180_s27 = int_to_ptr.hbm [resolvable:$true] %s179_s27 }
  0x26   : > { %s707_s28 = smov [#allocation5]   ;;  %s565_s5 = sshra.s32 %s180_s27, 4  ;;  %s566_s5 = int_to_ptr.hbm [resolvable:$true] %s565_s5 }
  0x27   : > { %s181_s30 = sshll.u32 %s707_s28, 4  ;;  %s567_s6 = scalar_lea.hbm %s566_s5, 16  ;;  %s182_s30 = int_to_ptr.vmem [resolvable:$true] %s181_s30 }
  0x28   : > { %p568_p7 = scmp.ne.s32.totalorder %s566_s5, %s567_s6  ;;  %s572_s7 = scalar_lea.hbm %s897_s1, 16 }
  0x29   : > { %p574_p3 = scmp.lt.s32.totalorder %s572_s7, %s567_s6 }
  0x2a   : > { %p570_p9 = pnand %p568_p7, %p539_p8 }
  0x2c   : > { %p571_p10 = pneg %p570_p9 }
  0x2e   : > { %p576_p5 = pnand %p574_p3, %p571_p10 }
  0x30   : > { %579 = shalt.err (!%p576_p5)
}
  0x31   : > { %445 = dma.hbm_to_vmem [thread:$0]  (!%p802_p2), %s180_s27, 256, %s182_s30, [#allocation6], %s705_s17, %s705_s17, %s706_s18  }
  0x32   : > { %193 = sbr.rel (%p822_p1) target bundleno = 92 (0x5c), region = 28  ;;  %s195_s8 = sand.u32 (!%p822_p1), 1, %s690_s13  }
  0x33   : > { %s423_s12 = sshll.u32 (!%p822_p1), %s195_s8, 4  ;;  %s196_s22 = scalar_lea.sflag (!%p822_p1), [#allocation3], %s195_s8 }
  0x34   : > { %s199_s23 = scalar_lea.vmem (!%p822_p1), [#allocation2], %s423_s12 }
  0x37   : > { %660 = dma.done.wait (%p773_p6), %s196_s22, 256  }
  0x38   : > { %662 = vsyncadd (%p773_p6), %s196_s22, 4294967040  ;;  %s206_s28 = scalar_lea.sflag [#allocation6], %s195_s8  ;;  %s209_s5 = scalar_lea.vmem [#allocation5], %s423_s12 }
  0x39   : > { %664 = dma.done.wait (%p773_p6), %s206_s28, 256  }
  0x3a   : > { %666 = vsyncadd (%p773_p6), %s206_s28, 4294967040  ;;  %s426_s4 = sshll.u32 %s694_s14, 4  ;;  %v255_v0 = vlaneseq  ;;  %v249_v6 = vld [vmem:[%s199_s23] sm:$0xff]  ;;  %v250_v7 = vld [vmem:[%s199_s23 + $0x8] sm:$0xff]  ;;  %s233_s21 = sand.u32 1, %s678_s10  }
  0x3b   : > { %v258_v1 = vstv %s426_s4  ;;  %v251_v16 = vld [vmem:[%s209_s5] sm:$0xff]  ;;  %v252_v17 = vld [vmem:[%s209_s5 + $0x8] sm:$0xff]  ;;  %s425_s17 = sshll.u32 %s233_s21, 3  ;;  %s428_s18 = sshll.u32 %s694_s14, 3 }
  0x3c   : > { %v256_v2 = vshrl.u32 %v255_v0, 7  ;;  %s306_s30 = scalar_lea.hbm %s898_s2, %s428_s18  ;;  %s235_s6 = scalar_lea.vmem [#allocation7], %s425_s17 }
  0x3d   : > { %s308_s29 = sshll.u32 %s235_s6, 4  ;;  %s310_s3 = sshll.u32 %s306_s30, 4  ;;  %s309_s29 = int_to_ptr.vmem [resolvable:$true] %s308_s29  ;;  %s311_s3 = int_to_ptr.hbm [resolvable:$true] %s310_s3 }
  0x3e   : > { %v257_v3 = vadd.s32 8, %v256_v2  ;;  %v259_v4 = vadd.s32 %v258_v1, %v256_v2  ;;  %s296_s7 = scalar_lea.sflag [#allocation4], %s233_s21  ;;  %s609_s8 = sshra.s32 %s311_s3, 4  ;;  %s610_s8 = int_to_ptr.hbm [resolvable:$true] %s609_s8 }
  0x3f   : > { %s611_s14 = scalar_lea.hbm %s610_s8, 8  ;;  %s615_s23 = scalar_lea.hbm %s898_s2, 16 }
  0x40   : > { %v260_v5 = vadd.s32 %v258_v1, %v257_v3  ;;  %vm261_vm0 = vcmp.lt.s32.totalorder %v259_v4, 16  ;;  %p612_p6 = scmp.ne.s32.totalorder %s610_s8, %s611_s14  ;;  %p616_p4 = scmp.lt.s32.totalorder %s610_s8, %s898_s2 }
  0x41   : > { %v263_v8 = vsel %vm261_vm0, %v249_v6, 1e-06  ;;  %v265_v18 = vsel %vm261_vm0, %v251_v16, 0.0  ;;  %p617_p11 = scmp.lt.s32.totalorder %s615_s23, %s611_s14 }
  0x42   : > { %vm262_vm1 = vcmp.lt.s32.totalorder %v260_v5, 16  ;;  %v267_v10 = vadd.f32 1e-06, %v263_v8  ;;  %v277_v12 = vsub.f32 1.0, %v263_v8  ;;  %v275_v24 = vsub.f32 1.0, %v265_v18  ;;  %p613_p2 = pnand %p612_p6, %p787_p12 }
  0x43   : > { %v264_v9 = vsel %vm262_vm1, %v250_v7, 1e-06  ;;  %v266_v20 = vsel %vm262_vm1, %v252_v17, 0.0  ;;  %p618_p1 = por %p617_p11, %p616_p4 }
  0x44   : > { %v268_v11 = vadd.f32 1e-06, %v264_v9  ;;  %v278_v13 = vsub.f32 1.0, %v264_v9  ;;  %527 = vlog2.f32 %v267_v10  ;;  %v279_v14 = vadd.f32 1e-06, %v277_v12  ;;  %p614_p8 = pneg %p613_p2 }
  0x45   : > { %v276_v26 = vsub.f32 1.0, %v266_v20 }
  0x46   : > { %529 = vlog2.f32 %v268_v11  ;;  %v280_v15 = vadd.f32 1e-06, %v278_v13  ;;  %p619_p7 = pnand %p618_p1, %p614_p8 }
  0x47   : > { %531 = vlog2.f32 %v279_v14 }
  0x48   : > { %533 = vlog2.f32 %v280_v15 }
  0x4a   : > { %v528_v19 = vpop.eup %527 }
  0x4b   : > { %v270_v22 = vmul.f32 0.6931472, %v528_v19 }
  0x4c   : > { %v530_v21 = vpop.eup %529 }
  0x4d   : > { %v272_v23 = vmul.f32 0.6931472, %v530_v21  ;;  %v532_v25 = vpop.eup %531  ;;  %v273_v28 = vmul.f32 %v270_v22, %v265_v18 }
  0x4e   : > { %v534_v27 = vpop.eup %533  ;;  %v282_v29 = vmul.f32 0.6931472, %v532_v25 }
  0x4f   : > { %v274_v30 = vmul.f32 %v272_v23, %v266_v20  ;;  %v284_v31 = vmul.f32 0.6931472, %v534_v27 }
  0x50   : > { %v285_v32 = vmul.f32 %v282_v29, %v275_v24 }
  0x51   : > { %v286_v33 = vmul.f32 %v284_v31, %v276_v26 }
  0x52   : > { %v287_v34 = vadd.f32 %v285_v32, %v273_v28 }
  0x53   : > { %v288_v35 = vadd.f32 %v286_v33, %v274_v30 }
  0x54   : > { %v289_v36 = vsub.f32 0.0, %v287_v34 }
  0x55   : > { %v290_v37 = vsub.f32 0.0, %v288_v35 }
  0x57   : > { %v292_v38 = vadd.f32 %v290_v37, %v289_v36 }
  0x59   : > { %294 = vst [vmem:[%s235_s6] sm:$0xff] %v292_v38 }
  0x5a   : > { %622 = shalt.err (!%p619_p7)
}
  0x5b   : > { %437 = dma.vmem_to_hbm [thread:$0]  (%p787_p12), %s309_s29, 128, %s311_s3, %s296_s7  }
  0x5c PF: > { %s322_s4 = sand.u32 1, %s674_s9   ;;  %p447_p9 = pnand %p415_p13, %p792_p0 }
  0x5d   : > { %s323_s21 = scalar_lea.sflag [#allocation4], %s322_s4 }
  0x5e   : > { %p448_p10 = pneg %p447_p9 }
  0x60   : > { %668 = dma.done.wait (%p448_p10), %s323_s21, 128  }
  0x61   : > { %670 = vsyncadd (%p448_p10), %s323_s21, 4294967168  ;;  %s21_s16 = sadd.s32 1, %s702_s16   ;;  %s905_s9 = smov %s678_s10 }
  0x62   : > { %p18_p3 = scmp.ge.s32.totalorder %s21_s16, 4   ;;  %s906_s10 = smov %s682_s11 }
  0x63   : > { %s907_s11 = smov %s781_s24  ;;  %s908_s12 = smov %s690_s13 }
  0x64   : > { %s886_s13 = smov 0   ;;  %s909_s14 = smov %s698_s15 }
  0x65   : > { %s910_s15 = smov %s912_s19  ;;  %20 = sbr.rel (!%p18_p3) target bundleno = 9 (0x9), region = 90 }
  0x6a   :  { %329 = vsyncpa [#allocation3], 1 }
  0x6b   :  { %331 = vsyncpa [#allocation3 + $0x1], 1 }
  0x6c   :  { %332 = vsyncpa [#allocation6], 1 }
  0x6d   :  { %334 = vsyncpa [#allocation6 + $0x1], 1 }
  0x6e   :  { %335 = vsyncpa [#allocation4], 1 }
  0x6f   :  { %337 = vsyncpa [#allocation4 + $0x1], 1 }

</bundles_post_ra>
